<compile_context>
chip_gen: v7x
topology: tpu7x:2x2x1
jax: 0.10.0
libtpu: 0.0.40
codegen_flags: <defaults>
</compile_context>

<pallas_src>
import jax
import jax.numpy as jnp
from jax.experimental import pallas as pl


# ----------------------------- static geometry -----------------------------
_GRID = 8         # conv2 outputs computed on an 8x8 extended grid per image
_VALID = 7        # real 7x7 feature map
# conv2 tap index i (or j) -> (conv1-output row/col parity, extended-grid shift)
_PH = (1, 0, 1)   # conv1 row 2z-1+i has parity 1, 0, 1 for i = 0, 1, 2
_SH = (1, 0, 0)   # ... and grid index z-1, z, z  (shift 1, 0, 0)


# ------------------------------- Pallas kernel ------------------------------

def _backbone_kernel(x_ref, w1_ref, w2_ref, patch_ref, avg_ref):
    """conv1(3x3,s2,p1)+ReLU -> conv2(3x3,s2,p1)+ReLU -> 7x7 extract + AvgPool2d(7).

    x_ref  : (B*64, 256) bf16  per-conv2-tap conv1 im2col, lane-concatenated;
                               each 28-lane block = 27 taps + 1 bias/valid lane.
    w1_ref : (256, 144) bf16   block-diagonal conv1 weights (+bias rows).
    w2_ref : (152, 32)  bf16   conv2 weights rows [0:144) + bias row 144.
    """
    k2 = w1_ref.shape[1]                  # 144 = 9 * c1
    c2 = w2_ref.shape[1]
    nb = patch_ref.shape[0]               # batch (static)
    npos = _VALID * _VALID                # 49
    gg = _GRID * _GRID                    # 64

    # conv1 for all nine conv2 taps in ONE MXU matmul (bias + padding/valid
    # masking folded into the operands); f32 accumulate, f32 ReLU, one bf16
    # cast for the conv2 operand.
    a1 = jnp.dot(x_ref[...], w1_ref[...], preferred_element_type=jnp.float32)
    a1 = jnp.maximum(a1, 0.0).astype(jnp.bfloat16)          # (B*64, 144)

    # conv2: ONE (B*64, 144)@(144, c2) MXU matmul, f32 bias + ReLU epilogue.
    b2 = w2_ref[k2:k2 + 8, :][0:1, :].astype(jnp.float32)   # aligned 8-row load
    z = jnp.dot(a1, w2_ref[0:k2, :], preferred_element_type=jnp.float32)
    z = jnp.maximum(z + b2, 0.0)                            # (B*64, c2) f32

    # 7x7 valid extraction: shared per-image (49, 64) one-hot selector built
    # from iotas (no O(B^2) constant, no extra input DMA).  AvgPool2d(7) is
    # the mean of the 49 selected rows.
    o = jax.lax.broadcasted_iota(jnp.int32, (npos, gg), 0)
    e = jax.lax.broadcasted_iota(jnp.int32, (npos, gg), 1)
    o_div7 = (o * 9363) >> 16                               # o // 7 for o < 49
    sel = (e == o + o_div7).astype(jnp.float32)             # valid row -> 8x8 index
    for b in range(nb):                                     # static, tiny loop
        zb = z[b * gg:(b + 1) * gg, :]                      # (64, c2)
        pz = jnp.dot(sel, zb, preferred_element_type=jnp.float32)   # (49, c2)
        patch_ref[b, :, :] = pz
        avg_ref[pl.ds(b, 1), :] = jnp.sum(pz, axis=0, keepdims=True) * (1.0 / npos)


# ------------------------------ host-side prep ------------------------------

def _conv1_operands(x_nhwc, w1, b1):
    """Build the lane-concatenated per-conv2-tap conv1 im2col and the matching
    block-diagonal conv1 weight matrix (bias + valid mask folded in)."""
    B, H, W, cin = x_nhwc.shape
    c1 = w1.shape[0]

    # conv1 im2col over the valid 14x14 output grid; lane order (i*3+j)*cin + c.
    xpad = jnp.pad(x_nhwc, ((0, 0), (1, 1), (1, 1), (0, 0)))            # 30x30
    taps = [xpad[:, i:i + H:2, j:j + W:2, :] for i in range(3) for j in range(3)]
    pat = jnp.concatenate(taps, axis=-1)                                # (B,14,14,27)
    ones = jnp.ones((B, _VALID, _VALID, 1), pat.dtype)

    blocks = []
    for i in range(3):                      # conv2 tap row
        p, dr = _PH[i], _SH[i]
        for j in range(3):                  # conv2 tap col
            q, dc = _PH[j], _SH[j]
            blk = pat[:, p::2, q::2, :]                     # conv1 phase (p,q): (B,7,7,27)
            blk = jnp.concatenate([blk, ones], axis=-1)     # + bias / valid lane -> 28
            # place on the 8x8 extended conv2-output grid, shifted by (dr, dc);
            # rows where this tap reads conv1 zero-padding stay all-zero.
            blk = jnp.pad(blk, ((0, 0), (dr, 1 - dr), (dc, 1 - dc), (0, 0)))
            blocks.append(blk)                              # (B,8,8,28)
    lhs = jnp.concatenate(blocks, axis=-1)                  # (B,8,8,252)
    lhs = lhs.reshape(B * _GRID * _GRID, -1)
    lane_pad = (-lhs.shape[1]) % 128
    lhs = jnp.pad(lhs, ((0, 0), (0, lane_pad))).astype(jnp.bfloat16)    # (B*64, 256)

    wflat = jnp.transpose(w1, (2, 3, 1, 0)).reshape(9 * cin, c1)        # (27, c1)
    wc = jnp.concatenate([wflat, b1.reshape(1, c1)], axis=0)            # (28, c1)
    wbig = jnp.einsum("ab,kc->akbc", jnp.eye(9, dtype=wc.dtype), wc)
    wbig = wbig.reshape(9 * wc.shape[0], 9 * c1)                        # (252, 144)
    wbig = jnp.pad(wbig, ((0, lane_pad), (0, 0))).astype(jnp.bfloat16)  # (256, 144)
    return lhs, wbig


def _conv2_operands(w2, b2):
    """(Cout, C1, 3, 3) -> (152, Cout) bf16: rows [t*C1 + ch] for tap t = i*3+j,
    plus the bias as row 144 (read separately in the kernel's f32 epilogue)."""
    c2, c1 = w2.shape[0], w2.shape[1]
    wflat = jnp.transpose(w2, (2, 3, 1, 0)).reshape(9 * c1, c2)         # (144, c2)
    wc = jnp.concatenate([wflat, b2.reshape(1, c2)], axis=0)            # (145, c2)
    wc = jnp.pad(wc, ((0, (-wc.shape[0]) % 8), (0, 0)))                 # (152, c2)
    return wc.astype(jnp.bfloat16)


# ------------------------------ module forward ------------------------------

def text_extractor_forward(images, params):
    """Mirrors TextExtractor.forward for NCHW images of shape (B, 3, 28, 28).

    Returns (patch_feats (B, 49, C), avg_feats (B, C))."""
    B, cin, H, W = images.shape
    assert (H, W) == (28, 28), "synthetic backbone expects 28x28 -> 7x7 map"
    c2 = params["w2"].shape[0]

    x = jnp.transpose(images, (0, 2, 3, 1))                 # NHWC once, up front
    lhs, w1big = _conv1_operands(x, params["w1"], params["b1"])
    w2c = _conv2_operands(params["w2"], params["b2"])

    patch_feats, avg_feats = pl.pallas_call(
        _backbone_kernel,
        out_shape=(
            jax.ShapeDtypeStruct((B, _VALID * _VALID, c2), jnp.float32),
            jax.ShapeDtypeStruct((B, c2), jnp.float32),
        ),
        # Grid-less single invocation: every operand is a full-array VMEM block
        # (~150 KB total), so nothing is double-buffered for a 1-step pipeline.
        # TODO(synk): for large batch, tile B*64 rows over a "parallel" grid
        # axis (v7x second TensorCore) and re-derive VMEM against 64 MiB.
    )(lhs, w1big, w2c)
    return patch_feats, avg_feats


# --------------------------------- reference --------------------------------

def _reference_forward(images, params):
    """Pure-XLA reference (conv operands rounded to bf16 to mirror the MXU inputs)."""
    def conv(x, w, b):
        xq = x.astype(jnp.bfloat16).astype(jnp.float32)
        wq = w.astype(jnp.bfloat16).astype(jnp.float32)
        y = jax.lax.conv_general_dilated(
            xq, wq, window_strides=(2, 2), padding=((1, 1), (1, 1)),
            dimension_numbers=("NCHW", "OIHW", "NCHW"),
            precision=jax.lax.Precision.HIGHEST)
        return jax.nn.relu(y + b.reshape(1, -1, 1, 1))

    z = conv(conv(images, params["w1"], params["b1"]), params["w2"], params["b2"])
    B, C = z.shape[0], z.shape[1]
    patch = jnp.transpose(z.reshape(B, C, -1), (0, 2, 1))
    avg = jnp.mean(patch, axis=1)
    return patch, avg


# ---------------------------------- driver ----------------------------------

def init_params():
    """Deterministic synthetic backbone weights (PyTorch conv layout)."""
    k0 = jax.random.PRNGKey(0)
    k1, k2, k3, k4 = jax.random.split(k0, 4)
    w1 = 0.1 * jax.random.normal(k1, (16, 3, 3, 3), dtype=jnp.float32)
    b1 = 0.01 * jax.random.normal(k2, (16,), dtype=jnp.float32)
    w2 = 0.1 * jax.random.normal(k3, (32, 16, 3, 3), dtype=jnp.float32)
    b2 = 0.01 * jax.random.normal(k4, (32,), dtype=jnp.float32)
    return {"w1": w1, "b1": b1, "w2": w2, "b2": b2}


if __name__ == "__main__":
    key = jax.random.PRNGKey(0)
    images = jax.random.normal(key, (2, 3, 28, 28), dtype=jnp.float32)  # NCHW
    params = init_params()

    fwd = jax.jit(text_extractor_forward)
    patch_feats, avg_feats = fwd(images, params)
    jax.block_until_ready((patch_feats, avg_feats))

    assert patch_feats.shape == (2, 49, 32), patch_feats.shape
    assert avg_feats.shape == (2, 32), avg_feats.shape

    ref_patch, ref_avg = _reference_forward(images, params)
    err_p = float(jnp.max(jnp.abs(patch_feats - ref_patch)))
    err_a = float(jnp.max(jnp.abs(avg_feats - ref_avg)))
    assert jnp.allclose(patch_feats, ref_patch, atol=2e-2, rtol=2e-2), err_p
    assert jnp.allclose(avg_feats, ref_avg, atol=2e-2, rtol=2e-2), err_a
    # internal consistency: avg pool == mean over the 49 patch positions
    assert jnp.allclose(avg_feats, jnp.mean(patch_feats, axis=1), atol=1e-4)

    print("KERNEL_OK")
</pallas_src>

<mosaic_0001>
module attributes {stable_mosaic.version = 11 : i64} {
  func.func @_backbone_kernel(%arg0: memref<128x256xbf16, #tpu.memory_space<vmem>>, %arg1: memref<256x144xbf16, #tpu.memory_space<vmem>>, %arg2: memref<152x32xbf16, #tpu.memory_space<vmem>>, %arg3: memref<2x49x32xf32, #tpu.memory_space<vmem>>, %arg4: memref<2x32xf32, #tpu.memory_space<vmem>>) attributes {dimension_semantics = [], scalar_prefetch = 0 : i64, scratch_operands = 0 : i64, tpu.core_type = #tpu.core_type<tc>} {
    %c0 = arith.constant 0 : index
    %c0_0 = arith.constant 0 : index
    %0 = vector.load %arg0[%c0, %c0_0] : memref<128x256xbf16, #tpu.memory_space<vmem>>, vector<128x256xbf16>
    %c0_1 = arith.constant 0 : index
    %c0_2 = arith.constant 0 : index
    %1 = vector.load %arg1[%c0_1, %c0_2] : memref<256x144xbf16, #tpu.memory_space<vmem>>, vector<256x144xbf16>
    %cst = arith.constant dense<0.000000e+00> : vector<128x144xf32>
    %2 = tpu.matmul %0, %1, %cst {dimension_numbers = #tpu.dot_dimension_numbers<[1], [0], [0], [1], [0, 0, 1, 1], [], []>} : vector<128x256xbf16>, vector<256x144xbf16>, vector<128x144xf32> -> vector<128x144xf32>
    %cst_3 = arith.constant 0.000000e+00 : f32
    %3 = vector.broadcast %cst_3 : f32 to vector<128x144xf32>
    %4 = arith.maximumf %2, %3 : vector<128x144xf32>
    %5 = arith.truncf %4 : vector<128x144xf32> to vector<128x144xbf16>
    %c144 = arith.constant 144 : index
    %c0_4 = arith.constant 0 : index
    %6 = vector.load %arg2[%c144, %c0_4] : memref<152x32xbf16, #tpu.memory_space<vmem>>, vector<8x32xbf16>
    %7 = vector.extract_strided_slice %6 {offsets = [0, 0], sizes = [1, 32], strides = [1, 1]} : vector<8x32xbf16> to vector<1x32xbf16>
    %8 = arith.extf %7 : vector<1x32xbf16> to vector<1x32xf32>
    %c0_5 = arith.constant 0 : index
    %c0_6 = arith.constant 0 : index
    %9 = vector.load %arg2[%c0_5, %c0_6] : memref<152x32xbf16, #tpu.memory_space<vmem>>, vector<144x32xbf16>
    %cst_7 = arith.constant dense<0.000000e+00> : vector<128x32xf32>
    %10 = tpu.matmul %5, %9, %cst_7 {dimension_numbers = #tpu.dot_dimension_numbers<[1], [0], [0], [1], [0, 0, 1, 1], [], []>} : vector<128x144xbf16>, vector<144x32xbf16>, vector<128x32xf32> -> vector<128x32xf32>
    %11 = vector.broadcast %8 : vector<1x32xf32> to vector<128x32xf32>
    %12 = arith.addf %10, %11 : vector<128x32xf32>
    %cst_8 = arith.constant 0.000000e+00 : f32
    %13 = vector.broadcast %cst_8 : f32 to vector<128x32xf32>
    %14 = arith.maximumf %12, %13 : vector<128x32xf32>
    %15 = tpu.iota {dimensions = array<i32: 0>} : vector<49x64xi32>
    %16 = tpu.iota {dimensions = array<i32: 1>} : vector<49x64xi32>
    %c9363_i32 = arith.constant 9363 : i32
    %17 = vector.broadcast %c9363_i32 : i32 to vector<49x64xi32>
    %18 = arith.muli %15, %17 : vector<49x64xi32>
    %c16_i32 = arith.constant 16 : i32
    %19 = vector.broadcast %c16_i32 : i32 to vector<49x64xi32>
    %20 = arith.shrsi %18, %19 : vector<49x64xi32>
    %21 = arith.addi %15, %20 : vector<49x64xi32>
    %22 = arith.cmpi eq, %16, %21 : vector<49x64xi32>
    %23 = arith.extui %22 : vector<49x64xi1> to vector<49x64xi32>
    %24 = arith.sitofp %23 : vector<49x64xi32> to vector<49x64xf32>
    %25 = vector.extract_strided_slice %14 {offsets = [0, 0], sizes = [64, 32], strides = [1, 1]} : vector<128x32xf32> to vector<64x32xf32>
    %cst_9 = arith.constant dense<0.000000e+00> : vector<49x32xf32>
    %26 = tpu.matmul %24, %25, %cst_9 {dimension_numbers = #tpu.dot_dimension_numbers<[1], [0], [0], [1], [0, 0, 1, 1], [], []>} : vector<49x64xf32>, vector<64x32xf32>, vector<49x32xf32> -> vector<49x32xf32>
    %c0_10 = arith.constant 0 : index
    %c0_11 = arith.constant 0 : index
    %c0_12 = arith.constant 0 : index
    %27 = vector.load %arg3[%c0_10, %c0_11, %c0_12] : memref<2x49x32xf32, #tpu.memory_space<vmem>>, vector<1x49x32xf32>
    %28 = vector.shape_cast %27 : vector<1x49x32xf32> to vector<49x32xf32>
    %29 = vector.shape_cast %26 : vector<49x32xf32> to vector<1x49x32xf32>
    tpu.vector_store %arg3[%c0_10, %c0_11, %c0_12], %29 {strides = array<i32>} : memref<2x49x32xf32, #tpu.memory_space<vmem>>, vector<1x49x32xf32>,
    %cst_13 = arith.constant dense<0.000000e+00> : vector<32xf32>
    %30 = vector.multi_reduction <add>, %26, %cst_13 [0] : vector<49x32xf32> to vector<32xf32>
    %31 = vector.shape_cast %30 : vector<32xf32> to vector<1x32xf32>
    %cst_14 = arith.constant 0.0204081628 : f32
    %32 = vector.broadcast %cst_14 : f32 to vector<1x32xf32>
    %33 = arith.mulf %31, %32 : vector<1x32xf32>
    %c0_15 = arith.constant 0 : index
    %c0_16 = arith.constant 0 : index
    %34 = vector.load %arg4[%c0_15, %c0_16] : memref<2x32xf32, #tpu.memory_space<vmem>>, vector<1x32xf32>
    tpu.vector_store %arg4[%c0_15, %c0_16], %33 {strides = array<i32>} : memref<2x32xf32, #tpu.memory_space<vmem>>, vector<1x32xf32>,
    %35 = vector.extract_strided_slice %14 {offsets = [64, 0], sizes = [64, 32], strides = [1, 1]} : vector<128x32xf32> to vector<64x32xf32>
    %cst_17 = arith.constant dense<0.000000e+00> : vector<49x32xf32>
    %36 = tpu.matmul %24, %35, %cst_17 {dimension_numbers = #tpu.dot_dimension_numbers<[1], [0], [0], [1], [0, 0, 1, 1], [], []>} : vector<49x64xf32>, vector<64x32xf32>, vector<49x32xf32> -> vector<49x32xf32>
    %c1 = arith.constant 1 : index
    %c0_18 = arith.constant 0 : index
    %c0_19 = arith.constant 0 : index
    %37 = vector.load %arg3[%c1, %c0_18, %c0_19] : memref<2x49x32xf32, #tpu.memory_space<vmem>>, vector<1x49x32xf32>
    %38 = vector.shape_cast %37 : vector<1x49x32xf32> to vector<49x32xf32>
    %39 = vector.shape_cast %36 : vector<49x32xf32> to vector<1x49x32xf32>
    tpu.vector_store %arg3[%c1, %c0_18, %c0_19], %39 {strides = array<i32>} : memref<2x49x32xf32, #tpu.memory_space<vmem>>, vector<1x49x32xf32>,
    %cst_20 = arith.constant dense<0.000000e+00> : vector<32xf32>
    %40 = vector.multi_reduction <add>, %36, %cst_20 [0] : vector<49x32xf32> to vector<32xf32>
    %41 = vector.shape_cast %40 : vector<32xf32> to vector<1x32xf32>
    %cst_21 = arith.constant 0.0204081628 : f32
    %42 = vector.broadcast %cst_21 : f32 to vector<1x32xf32>
    %43 = arith.mulf %41, %42 : vector<1x32xf32>
    %c1_22 = arith.constant 1 : index
    %c0_23 = arith.constant 0 : index
    %44 = vector.load %arg4[%c1_22, %c0_23] : memref<2x32xf32, #tpu.memory_space<vmem>>, vector<1x32xf32>
    tpu.vector_store %arg4[%c1_22, %c0_23], %43 {strides = array<i32>} : memref<2x32xf32, #tpu.memory_space<vmem>>, vector<1x32xf32>,
    return
  }
}

</mosaic_0001>

<bundles_post_ra>
// kernel: text_extractor_forward.1
= control target key start
LH: loop header
LB: loop body
LE: loop exit
PB: predicated region body
PF: predicated region fallthrough
CT: control target
= control target key end

     0   :  { %v1373_v2 = vmov 0   ;;  %s1789_s0 = inlined_call_operand.vmem [shape: bf16[128,256], index: 0, kind: input, shape index: {}]   ;;  %s1790_s1 = inlined_call_operand.vmem [shape: bf16[256,144], index: 1, kind: input, shape index: {}]   ;;  %s1791_s2 = inlined_call_operand.vmem [shape: bf16[152,32], index: 2, kind: input, shape index: {}]   ;;  %s1792_s3 = inlined_call_operand.vmem [shape: f32[2,49,32], index: 3, kind: output, shape index: {0}]   ;;  %s1793_s4 = inlined_call_operand.hbm [shape: f32[2,32], index: 4, kind: output, shape index: {1}]  }
   0x1   :  { %v1268_v0 = vld [vmem:[%s1790_s1 + $0x4] ss:$8 sps:$4 sm:$0xff]   ;;  %v1270_v1 = vld [vmem:[%s1790_s1] ss:$8 sps:$4 sm:$0xff]   ;;  %570 = vmatprep.subr.bf16.mxu1 %v1373_v2  ;;  %v1271_v3 = vld [vmem:[%s1790_s1 + $0x14] ss:$8 sps:$4 sm:$0xff]  }
   0x2   :  { %306 = vmatprep.subr.bf16.mxu0 %v1268_v0  ;;  %v1273_v4 = vld [vmem:[%s1790_s1 + $0x10] ss:$8 sps:$4 sm:$0xff]   ;;  %v1274_v5 = vld [vmem:[%s1790_s1 + $0x24] ss:$8 sps:$4 sm:$0xff]   ;;  %v1276_v6 = vld [vmem:[%s1790_s1 + $0x20] ss:$8 sps:$4 sm:$0xff]  }
   0x3   :  { %307 = vmatpush1.bf16.msra.mxu0 %v1270_v1  ;;  %v1277_v7 = vld [vmem:[%s1790_s1 + $0x34] ss:$8 sps:$4 sm:$0xff]   ;;  %v1279_v8 = vld [vmem:[%s1790_s1 + $0x30] ss:$8 sps:$4 sm:$0xff]   ;;  %v1280_v9 = vld [vmem:[%s1790_s1 + $0x44] ss:$8 sps:$4 sm:$0xff]  }
   0x4   :  { %308 = vmatprep.subr.bf16.mxu0 %v1271_v3  ;;  %v1282_v10 = vld [vmem:[%s1790_s1 + $0x40] ss:$8 sps:$4 sm:$0xff]   ;;  %v1283_v11 = vld [vmem:[%s1790_s1 + $0x54] ss:$8 sps:$4 sm:$0xff]   ;;  %v1285_v12 = vld [vmem:[%s1790_s1 + $0x50] ss:$8 sps:$4 sm:$0xff]  }
   0x5   :  { %v1286_v13 = vld [vmem:[%s1790_s1 + $0x64] ss:$8 sps:$4 sm:$0xff]   ;;  %v1288_v15 = vld [vmem:[%s1790_s1 + $0x60] ss:$8 sps:$4 sm:$0xff]   ;;  %v1289_v16 = vld [vmem:[%s1790_s1 + $0x74] ss:$8 sps:$4 sm:$0xff]  }
   0x6   :  { %v1318_v14 = vld [vmem:[%s1789_s0 + $0x4] ss:$8 sps:$4 sm:$0xff]   ;;  %v1291_v17 = vld [vmem:[%s1790_s1 + $0x70] ss:$8 sps:$4 sm:$0xff]   ;;  %v1294_v19 = vld [vmem:[%s1790_s1 + $0x80] ss:$8 sps:$4 sm:$0xff]  }
   0x7   :  { %309 = vmatpush1.bf16.msra.mxu0 %v1273_v4  ;;  %338 = vmatprep.mubr.bf16.mxu0 %v1318_v14  ;;  %v1292_v18 = vld [vmem:[%s1790_s1 + $0x84] ss:$8 sps:$4 sm:$0xff]   ;;  %v1295_v20 = vld [vmem:[%s1790_s1 + $0x94] ss:$8 sps:$4 sm:$0xff]   ;;  %v1297_v23 = vld [vmem:[%s1790_s1 + $0x90] ss:$8 sps:$4 sm:$0xff]  }
   0x8   :  { %310 = vmatprep.subr.bf16.mxu0 %v1274_v5  ;;  %v1340_v21 = vld [vmem:[%s1791_s2] sm:$0xff]   ;;  %v1341_v22 = vld [vmem:[%s1791_s2 + $0x8] sm:$0xff]   ;;  %v1342_v26 = vld [vmem:[%s1791_s2 + $0x10] sm:$0xff]  }
   0x9   :  { %571 = vmatpush1.bf16.msra.mxu1 %v1340_v21  ;;  %v1298_v24 = vld [vmem:[%s1790_s1 + $0xa4] ss:$8 sps:$4 sm:$0xff]   ;;  %v1300_v25 = vld [vmem:[%s1790_s1 + $0xa0] ss:$8 sps:$4 sm:$0xff]   ;;  %v1301_v27 = vld [vmem:[%s1790_s1 + $0xb4] ss:$8 sps:$4 sm:$0xff]  }
   0xa   :  { %572 = vmatprep.subr.bf16.mxu1 %v1373_v2 }
   0xb   :  { %311 = vmatpush1.bf16.msra.mxu0 %v1276_v6 }
   0xc   :  { %312 = vmatprep.subr.bf16.mxu0 %v1277_v7 }
   0xd   :  { %573 = vmatpush1.bf16.msra.mxu1 %v1341_v22 }
   0xe   :  { %574 = vmatprep.subr.bf16.mxu1 %v1373_v2 }
   0xf   :  { %313 = vmatpush1.bf16.msra.mxu0 %v1279_v8 }
  0x10   :  { %314 = vmatprep.subr.bf16.mxu0 %v1280_v9 }
  0x13   :  { %315 = vmatpush1.bf16.msra.mxu0 %v1282_v10 }
  0x14   :  { %316 = vmatprep.subr.bf16.mxu0 %v1283_v11 }
  0x17   :  { %317 = vmatpush1.bf16.msra.mxu0 %v1285_v12 }
  0x18   :  { %318 = vmatprep.subr.bf16.mxu0 %v1286_v13 }
  0x1b   :  { %319 = vmatpush1.bf16.msra.mxu0 %v1288_v15 }
  0x1c   :  { %320 = vmatprep.subr.bf16.mxu0 %v1289_v16 }
  0x1f   :  { %321 = vmatpush1.bf16.msra.mxu0 %v1291_v17 }
  0x20   :  { %322 = vmatprep.subr.bf16.mxu0 %v1292_v18 }
  0x23   :  { %323 = vmatpush1.bf16.msra.mxu0 %v1294_v19 }
  0x24   :  { %324 = vmatprep.subr.bf16.mxu0 %v1295_v20 }
  0x27   :  { %325 = vmatpush1.bf16.msra.mxu0 %v1297_v23 }
  0x28   :  { %326 = vmatprep.subr.bf16.mxu0 %v1298_v24 }
  0x29   :  { %10 = vsyncpa [#allocation3], 0  ;;  %575 = vmatpush1.bf16.msra.mxu1 %v1342_v26  ;;  %v1343_v28 = vld [vmem:[%s1791_s2 + $0x18] sm:$0xff]   ;;  %v1304_v30 = vld [vmem:[%s1790_s1 + $0xc4] ss:$8 sps:$4 sm:$0xff]   ;;  %vm545_vm0 = vcmask 130048  }
  0x2a   :  { %v1303_v29 = vld [vmem:[%s1790_s1 + $0xb0] ss:$8 sps:$4 sm:$0xff]   ;;  %576 = vmatprep.subr.bf16.mxu1 %v1373_v2  ;;  %v1344_v31 = vld [vmem:[%s1791_s2 + $0x20] sm:$0xff]   ;;  %v1307_v33 = vld [vmem:[%s1790_s1 + $0xd4] ss:$8 sps:$4 sm:$0xff]   ;;  %vm1375_vm1 = vmmov 0  }
  0x2b   :  { %327 = vmatpush1.bf16.msra.mxu0 %v1300_v25  ;;  %v1306_v32 = vld [vmem:[%s1790_s1 + $0xc0] ss:$8 sps:$4 sm:$0xff]   ;;  %v1309_v35 = vld [vmem:[%s1790_s1 + $0xd0] ss:$8 sps:$4 sm:$0xff]   ;;  %v1310_v36 = vld [vmem:[%s1790_s1 + $0xe4] ss:$8 sps:$4 sm:$0xff]  }
  0x2c   :  { %328 = vmatprep.subr.bf16.mxu0 %v1301_v27  ;;  %v1345_v34 = vld [vmem:[%s1791_s2 + $0x28] sm:$0xff]   ;;  %v1346_v37 = vld [vmem:[%s1791_s2 + $0x30] sm:$0xff]   ;;  %v1347_v56 = vld [vmem:[%s1791_s2 + $0x38] sm:$0xff]   ;;  %vm735_vm3 = vcmask 523264   ;;  %vm857_vm10 = vcmask 261120   ;;  %vm864_vm11 = vcmask 253952  }
  0x2d   :  { %577 = vmatpush1.bf16.msra.mxu1 %v1343_v28  ;;  %v1312_v38 = vld [vmem:[%s1790_s1 + $0xe0] ss:$8 sps:$4 sm:$0xff]   ;;  %v1313_v39 = vld [vmem:[%s1790_s1 + $0xf4] ss:$8 sps:$4 sm:$0xff]   ;;  %v1315_v40 = vld [vmem:[%s1790_s1 + $0xf0] ss:$8 sps:$4 sm:$0xff]  }
  0x2e   :  { %578 = vmatprep.subr.bf16.mxu1 %v1373_v2  ;;  %v1316_v41 = vld [vmem:[%s1789_s0] ss:$8 sps:$4 sm:$0xff]   ;;  %v1319_v42 = vld [vmem:[%s1789_s0 + $0x14] ss:$8 sps:$4 sm:$0xff]   ;;  %v1321_v43 = vld [vmem:[%s1789_s0 + $0x10] ss:$8 sps:$4 sm:$0xff]  }
  0x2f   :  { %329 = vmatpush1.bf16.msra.mxu0 %v1303_v29  ;;  %v1322_v44 = vld [vmem:[%s1789_s0 + $0x24] ss:$8 sps:$4 sm:$0xff]   ;;  %v1324_v45 = vld [vmem:[%s1789_s0 + $0x20] ss:$8 sps:$4 sm:$0xff]   ;;  %v1325_v46 = vld [vmem:[%s1789_s0 + $0x34] ss:$8 sps:$4 sm:$0xff]  }
  0x30   :  { %330 = vmatprep.subr.bf16.mxu0 %v1304_v30  ;;  %v1327_v47 = vld [vmem:[%s1789_s0 + $0x30] ss:$8 sps:$4 sm:$0xff]   ;;  %v1328_v48 = vld [vmem:[%s1789_s0 + $0x44] ss:$8 sps:$4 sm:$0xff]   ;;  %v1330_v49 = vld [vmem:[%s1789_s0 + $0x40] ss:$8 sps:$4 sm:$0xff]  }
  0x31   :  { %579 = vmatpush1.bf16.msra.mxu1 %v1344_v31  ;;  %v1331_v50 = vld [vmem:[%s1789_s0 + $0x54] ss:$8 sps:$4 sm:$0xff]   ;;  %v1333_v51 = vld [vmem:[%s1789_s0 + $0x50] ss:$8 sps:$4 sm:$0xff]   ;;  %v1334_v52 = vld [vmem:[%s1789_s0 + $0x64] ss:$8 sps:$4 sm:$0xff]  }
  0x32   :  { %580 = vmatprep.subr.bf16.mxu1 %v1373_v2  ;;  %v1336_v53 = vld [vmem:[%s1789_s0 + $0x60] ss:$8 sps:$4 sm:$0xff]   ;;  %v1337_v54 = vld [vmem:[%s1789_s0 + $0x74] ss:$8 sps:$4 sm:$0xff]   ;;  %v1339_v55 = vld [vmem:[%s1789_s0 + $0x70] ss:$8 sps:$4 sm:$0xff]  }
  0x33   :  { %331 = vmatpush1.bf16.msra.mxu0 %v1306_v32  ;;  %v1348_v57 = vld [vmem:[%s1791_s2 + $0x40] sm:$0xff]   ;;  %s1377_s1 = smov [#allocation2]  }
  0x34   :  { %332 = vmatprep.subr.bf16.mxu0 %v1307_v33 }
  0x35   :  { %581 = vmatpush1.bf16.msra.mxu1 %v1345_v34 }
  0x36   :  { %582 = vmatprep.subr.bf16.mxu1 %v1373_v2 }
  0x37   :  { %333 = vmatpush1.bf16.msra.mxu0 %v1309_v35 }
  0x38   :  { %334 = vmatprep.subr.bf16.mxu0 %v1310_v36 }
  0x39   :  { %583 = vmatpush1.bf16.msra.mxu1 %v1346_v37 }
  0x3a   :  { %584 = vmatprep.subr.bf16.mxu1 %v1373_v2 }
  0x3b   :  { %335 = vmatpush1.bf16.msra.mxu0 %v1312_v38 }
  0x3c   :  { %336 = vmatprep.subr.bf16.mxu0 %v1313_v39 }
  0x3d   :  { %585 = vmatpush1.bf16.msra.mxu1 %v1347_v56 }
  0x3e   :  { %586 = vmatprep.subr.bf16.mxu1 %v1373_v2 }
  0x3f   :  { %337 = vmatpush1.bf16.msra.mxu0 %v1315_v40 }
  0x41   :  { %587 = vmatpush1.bf16.msra.mxu1 %v1348_v57 }
  0x42   :  { %339 = vmatmul.mubr.bf16.vlgmr.msra.gmra.mrb[0].mxu0 %v1316_v41 }
  0x43   :  { %348 = vmatprep.mubr.bf16.mxu0 %v1319_v42 }
  0x4a   :  { %349 = vmatmul.mubr.bf16.gmra.mrb[4].mxu0 %v1321_v43 }
  0x4b   :  { %358 = vmatprep.mubr.bf16.mxu0 %v1322_v44 }
  0x52   :  { %359 = vmatmul.mubr.bf16.gmra.mrb[8].mxu0 %v1324_v45 }
  0x53   :  { %368 = vmatprep.mubr.bf16.mxu0 %v1325_v46 }
  0x5a   :  { %369 = vmatmul.mubr.bf16.gmra.mrb[12].mxu0 %v1327_v47 }
  0x5b   :  { %378 = vmatprep.mubr.bf16.mxu0 %v1328_v48 }
  0x62   :  { %379 = vmatmul.mubr.bf16.gmra.mrb[16].mxu0 %v1330_v49 }
  0x63   :  { %388 = vmatprep.mubr.bf16.mxu0 %v1331_v50 }
  0x6a   :  { %389 = vmatmul.mubr.bf16.gmra.mrb[20].mxu0 %v1333_v51 }
  0x6b   :  { %398 = vmatprep.mubr.bf16.mxu0 %v1334_v52 }
  0x72   :  { %399 = vmatmul.mubr.bf16.gmra.mrb[24].mxu0 %v1336_v53 }
  0x73   :  { %408 = vmatprep.mubr.bf16.mxu0 %v1337_v54 }
  0x7a   :  { %409 = vmatmul.mubr.bf16.gmra.mrb[28].mxu0 %v1339_v55 }
 0x115   :  { %v340_v58 = vpop.f32.mrb[0].mxu0 }
 0x116   :  { %v342_v59 = vpop.f32.mrb[1].mxu0  ;;  %v419_v61 = vmax.f32 %v340_v58, 0.0 }
 0x117   :  { %v344_v60 = vpop.f32.mrb[2].mxu0  ;;  %v420_v0 = vmax.f32 %v342_v59, 0.0 }
 0x118   :  { %v421_v62 = vmax.f32 %v344_v60, 0.0  ;;  %v346_v63 = vpop.f32.mrb[3].mxu0 }
 0x119   :  { %v422_v1 = vmax.f32 %v346_v63, 0.0 }
 0x11a   :  { %v451_v3 = vpack.c.bf16 %v421_v62, %v419_v61 }
 0x11b   :  { %v452_v4 = vpack.c.bf16 %v422_v1, %v420_v0 }
 0x11d   :  { %v350_v5 = vpop.f32.mrb[4].mxu0  ;;  %1091 = vmatprep.mubr.msk.bf16.mxu1 %vm545_vm0, %v452_v4 }
 0x11e   :  { %v352_v2 = vpop.f32.mrb[5].mxu0  ;;  %603 = vmatmul.mubr.bf16.vlgmr.msra.gmra.mrb[0].mxu1 %v451_v3  ;;  %v423_v7 = vmax.f32 %v350_v5, 0.0 }
 0x11f   :  { %v354_v6 = vpop.f32.mrb[6].mxu0  ;;  %v424_v10 = vmax.f32 %v352_v2, 0.0 }
 0x120   :  { %v425_v8 = vmax.f32 %v354_v6, 0.0  ;;  %v356_v9 = vpop.f32.mrb[7].mxu0 }
 0x121   :  { %v426_v11 = vmax.f32 %v356_v9, 0.0 }
 0x122   :  { %v453_v12 = vpack.c.bf16 %v425_v8, %v423_v7 }
 0x123   :  { %v454_v13 = vpack.c.bf16 %v426_v11, %v424_v10  ;;  %v1374_v10 = vmov 0.0|0.0   ;;  %v1376_v11 = vmov 0.0  }
 0x124   :  { %1231 = vmatprep.subr.bf16.mxu1 %v1374_v10  ;;  %1243 = vmatprep.subr.bf16.mxu0 %v1374_v10 }
 0x125   :  { %v360_v14 = vpop.f32.mrb[8].mxu0  ;;  %1092 = vmatprep.mubr.msk.bf16.mxu1 %vm545_vm0, %v454_v13  ;;  %1210 = vmatprep.mubr.msk.f32.mxu0 %vm1375_vm1, %v1376_v11 }
 0x126   :  { %v362_v15 = vpop.f32.mrb[9].mxu0  ;;  %611 = vmatmul.mubr.bf16.gmra.mrb[4].mxu1 %v453_v12  ;;  %v427_v17 = vmax.f32 %v360_v14, 0.0  ;;  %v487_v12 = vlaneseq  ;;  %v467_v14 = vld [vmem:[%s1791_s2 + $0x48] sm:$0xf] }
 0x127   :  { %v364_v16 = vpop.f32.mrb[10].mxu0  ;;  %v428_v20 = vmax.f32 %v362_v15, 0.0  ;;  %v468_v15 = vunpack.c.l.bf16 %v467_v14 }
 0x128   :  { %v429_v18 = vmax.f32 %v364_v16, 0.0  ;;  %v366_v19 = vpop.f32.mrb[11].mxu0  ;;  %v1597_v13 = vshrl.u32 %v487_v12, 7 }
 0x129   :  { %v430_v21 = vmax.f32 %v366_v19, 0.0 }
 0x12a   :  { %v455_v22 = vpack.c.bf16 %v429_v18, %v427_v17  ;;  %v489_v16 = vsub.s32 0, %v1597_v13 }
 0x12b   :  { %v456_v23 = vpack.c.bf16 %v430_v21, %v428_v20 }
 0x12c   :  { %v1603_v17 = vrot.slane %v468_v15, %v489_v16  ;;  %v689_v15 = vadd.s32 40, %v1597_v13 }
 0x12d   :  { %v370_v24 = vpop.f32.mrb[12].mxu0  ;;  %1093 = vmatprep.mubr.msk.bf16.mxu1 %vm545_vm0, %v456_v23 }
 0x12e   :  { %v372_v25 = vpop.f32.mrb[13].mxu0  ;;  %619 = vmatmul.mubr.bf16.gmra.mrb[8].mxu1 %v455_v22  ;;  %v431_v27 = vmax.f32 %v370_v24, 0.0 }
 0x12f   :  { %v374_v26 = vpop.f32.mrb[14].mxu0  ;;  %v432_v30 = vmax.f32 %v372_v25, 0.0 }
 0x130   :  { %v433_v28 = vmax.f32 %v374_v26, 0.0  ;;  %v376_v29 = vpop.f32.mrb[15].mxu0 }
 0x131   :  { %v434_v31 = vmax.f32 %v376_v29, 0.0 }
 0x132   :  { %v457_v32 = vpack.c.bf16 %v433_v28, %v431_v27 }
 0x133   :  { %v458_v33 = vpack.c.bf16 %v434_v31, %v432_v30 }
 0x135   :  { %v380_v34 = vpop.f32.mrb[16].mxu0  ;;  %1094 = vmatprep.mubr.msk.bf16.mxu1 %vm545_vm0, %v458_v33 }
 0x136   :  { %v382_v35 = vpop.f32.mrb[17].mxu0  ;;  %627 = vmatmul.mubr.bf16.gmra.mrb[12].mxu1 %v457_v32  ;;  %v435_v37 = vmax.f32 %v380_v34, 0.0 }
 0x137   :  { %v384_v36 = vpop.f32.mrb[18].mxu0  ;;  %v436_v40 = vmax.f32 %v382_v35, 0.0 }
 0x138   :  { %v437_v38 = vmax.f32 %v384_v36, 0.0  ;;  %v386_v39 = vpop.f32.mrb[19].mxu0 }
 0x139   :  { %v438_v41 = vmax.f32 %v386_v39, 0.0 }
 0x13a   :  { %v459_v42 = vpack.c.bf16 %v437_v38, %v435_v37 }
 0x13b   :  { %v460_v43 = vpack.c.bf16 %v438_v41, %v436_v40  ;;  %v693_v40 = vmul.u32 9363, %v1597_v13  ;;  %v685_v41 = vadd.s32 8, %v1597_v13 }
 0x13d   :  { %1095 = vmatprep.mubr.msk.bf16.mxu1 %vm545_vm0, %v460_v43  ;;  %v390_v44 = vpop.f32.mrb[20].mxu0 }
 0x13e   :  { %635 = vmatmul.mubr.bf16.gmra.mrb[16].mxu1 %v459_v42  ;;  %v392_v45 = vpop.f32.mrb[21].mxu0  ;;  %v439_v47 = vmax.f32 %v390_v44, 0.0 }
 0x13f   :  { %v394_v46 = vpop.f32.mrb[22].mxu0  ;;  %v440_v50 = vmax.f32 %v392_v45, 0.0 }
 0x140   :  { %v441_v48 = vmax.f32 %v394_v46, 0.0  ;;  %v396_v49 = vpop.f32.mrb[23].mxu0  ;;  %v686_v46 = vadd.s32 16, %v1597_v13 }
 0x141   :  { %v442_v51 = vmax.f32 %v396_v49, 0.0 }
 0x142   :  { %v461_v52 = vpack.c.bf16 %v441_v48, %v439_v47  ;;  %v700_v47 = vshra.s32 %v693_v40, 16  ;;  %v694_v48 = vmul.u32 9363, %v685_v41 }
 0x143   :  { %v462_v53 = vpack.c.bf16 %v442_v51, %v440_v50 }
 0x145   :  { %1096 = vmatprep.mubr.msk.bf16.mxu1 %vm545_vm0, %v462_v53  ;;  %v400_v54 = vpop.f32.mrb[24].mxu0  ;;  %v695_v53 = vmul.u32 9363, %v686_v46 }
 0x146   :  { %643 = vmatmul.mubr.bf16.gmra.mrb[20].mxu1 %v461_v52  ;;  %v402_v55 = vpop.f32.mrb[25].mxu0  ;;  %v443_v57 = vmax.f32 %v400_v54, 0.0 }
 0x147   :  { %v404_v56 = vpop.f32.mrb[26].mxu0  ;;  %v444_v60 = vmax.f32 %v402_v55, 0.0  ;;  %v1618_v55 = vand.u32 127, %v487_v12 }
 0x148   :  { %v445_v58 = vmax.f32 %v404_v56, 0.0  ;;  %v406_v59 = vpop.f32.mrb[27].mxu0  ;;  %v707_v56 = vadd.s32 %v700_v47, %v1597_v13 }
 0x149   :  { %v446_v61 = vmax.f32 %v406_v59, 0.0 }
 0x14a   :  { %v463_v62 = vpack.c.bf16 %v445_v58, %v443_v57  ;;  %v701_v57 = vshra.s32 %v694_v48, 16  ;;  %v687_v58 = vadd.s32 24, %v1597_v13  ;;  %vm714_vm2 = vcmp.eq.s32.totalorder %v1618_v55, %v707_v56 }
 0x14b   :  { %v464_v63 = vpack.c.bf16 %v446_v61, %v444_v60 }
 0x14d   :  { %1097 = vmatprep.mubr.msk.bf16.mxu1 %vm545_vm0, %v464_v63  ;;  %v410_v0 = vpop.f32.mrb[28].mxu0  ;;  %v702_v63 = vshra.s32 %v695_v53, 16 }
 0x14e   :  { %651 = vmatmul.mubr.bf16.gmra.mrb[24].mxu1 %v463_v62  ;;  %v412_v1 = vpop.f32.mrb[29].mxu0  ;;  %v447_v4 = vmax.f32 %v410_v0, 0.0  ;;  %v708_v0 = vadd.s32 %v701_v57, %v685_v41 }
 0x14f   :  { %v414_v3 = vpop.f32.mrb[30].mxu0  ;;  %v448_v6 = vmax.f32 %v412_v1, 0.0  ;;  %v696_v1 = vmul.u32 9363, %v687_v58 }
 0x150   :  { %v449_v5 = vmax.f32 %v414_v3, 0.0  ;;  %v416_v2 = vpop.f32.mrb[31].mxu0  ;;  %v688_v3 = vadd.s32 32, %v1597_v13  ;;  %vm715_vm4 = vcmp.eq.s32.totalorder %v1618_v55, %v708_v0 }
 0x151   :  { %v450_v7 = vmax.f32 %v416_v2, 0.0  ;;  %v703_v12 = vshra.s32 %v696_v1, 16 }
 0x152   :  { %v465_v8 = vpack.c.bf16 %v449_v5, %v447_v4  ;;  %v697_v14 = vmul.u32 9363, %v688_v3 }
 0x153   :  { %v466_v9 = vpack.c.bf16 %v450_v7, %v448_v6  ;;  %v1627_v7 = vsel %vm714_vm2, 1.0, %v1376_v11 }
 0x155   :  { %1098 = vmatprep.mubr.msk.bf16.mxu1 %vm545_vm0, %v466_v9 }
 0x156   :  { %659 = vmatmul.mubr.bf16.gmra.mrb[28].mxu1 %v465_v8  ;;  %v709_v8 = vadd.s32 %v702_v63, %v686_v46 }
 0x157   :  { %1173 = vmatprep.mubr.msk.f32.mxu1 %vm1375_vm1, %v1376_v11 }
 0x158   :  { %vm716_vm5 = vcmp.eq.s32.totalorder %v1618_v55, %v709_v8 }
 0x1f1   :  { %v604_v18 = vpop.f32.mrb[0].mxu1 }
 0x1f2   :  { %v605_v19 = vadd.f32 %v604_v18, %v1603_v17  ;;  %v606_v20 = vpop.f32.mrb[1].mxu1 }
 0x1f3   :  { %v607_v21 = vpop.f32.mrb[2].mxu1 }
 0x1f4   :  { %v608_v22 = vadd.f32 %v607_v21, %v1603_v17  ;;  %v609_v23 = vpop.f32.mrb[3].mxu1  ;;  %v667_v24 = vmax.f32 %v605_v19, 0.0  ;;  %v1638_v21 = vsel %vm715_vm4, 1.0, %v1376_v11 }
 0x1f5   :  { %v704_v23 = vshra.s32 %v697_v14, 16 }
 0x1f6   :  { %v668_v25 = vmax.f32 %v608_v22, 0.0  ;;  %v710_v22 = vadd.s32 %v703_v12, %v687_v58 }
 0x1f8   :  { %v1232_v26 = vpack.c.bf16 %v668_v25, %v667_v24  ;;  %v698_v24 = vmul.u32 9363, %v689_v15  ;;  %v690_v25 = vadd.s32 48, %v1597_v13  ;;  %vm717_vm6 = vcmp.eq.s32.totalorder %v1618_v55, %v710_v22 }
 0x1f9   :  { %v612_v27 = vpop.f32.mrb[4].mxu1  ;;  %v711_v13 = vadd.s32 %v704_v23, %v688_v3 }
 0x1fa   :  { %v613_v28 = vadd.f32 %v612_v27, %v1603_v17  ;;  %v614_v29 = vpop.f32.mrb[5].mxu1  ;;  %1233 = vmatpush3.bf16.msra.mxu1 %v1232_v26 }
 0x1fb   :  { %v615_v30 = vpop.f32.mrb[6].mxu1  ;;  %1234 = vmatprep.subr.bf16.mxu1 %v1374_v10  ;;  %vm718_vm7 = vcmp.eq.s32.totalorder %v1618_v55, %v711_v13 }
 0x1fc   :  { %v616_v31 = vadd.f32 %v615_v30, %v1603_v17  ;;  %v617_v32 = vpop.f32.mrb[7].mxu1  ;;  %v669_v33 = vmax.f32 %v613_v28, 0.0  ;;  %v1646_v30 = vsel %vm716_vm5, 1.0, %v1376_v11 }
 0x1fd   :  { %v705_v32 = vshra.s32 %v698_v24, 16 }
 0x1fe   :  { %v670_v34 = vmax.f32 %v616_v31, 0.0 }
 0x200   :  { %v1235_v35 = vpack.c.bf16 %v670_v34, %v669_v33  ;;  %v699_v33 = vmul.u32 9363, %v690_v25 }
 0x201   :  { %v620_v36 = vpop.f32.mrb[8].mxu1 }
 0x202   :  { %v621_v37 = vadd.f32 %v620_v36, %v1603_v17  ;;  %v622_v38 = vpop.f32.mrb[9].mxu1  ;;  %1236 = vmatpush3.bf16.msra.mxu1 %v1235_v35  ;;  %v706_v40 = vshra.s32 %v699_v33, 16 }
 0x203   :  { %v623_v39 = vpop.f32.mrb[10].mxu1  ;;  %1237 = vmatprep.subr.bf16.mxu1 %v1374_v10  ;;  %v1102_v38 = vsel %vm717_vm6, 1.0, %v1376_v11 }
 0x204   :  { %v624_v42 = vadd.f32 %v623_v39, %v1603_v17  ;;  %v625_v43 = vpop.f32.mrb[11].mxu1  ;;  %v671_v44 = vmax.f32 %v621_v37, 0.0  ;;  %v712_v39 = vadd.s32 %v705_v32, %v689_v15  ;;  %v713_v47 = vadd.s32 %v706_v40, %v690_v25 }
 0x206   :  { %v672_v45 = vmax.f32 %v624_v42, 0.0  ;;  %vm719_vm8 = vcmp.eq.s32.totalorder %v1618_v55, %v712_v39  ;;  %vm720_vm9 = vcmp.eq.s32.totalorder %v1618_v55, %v713_v47 }
 0x207   :  { %v1105_v58 = vsel %vm720_vm9, 1.0, %v1376_v11 }
 0x208   :  { %v1238_v49 = vpack.c.bf16 %v672_v45, %v671_v44  ;;  %v1103_v45 = vsel %vm718_vm7, 1.0, %v1376_v11 }
 0x209   :  { %v628_v50 = vpop.f32.mrb[12].mxu1 }
 0x20a   :  { %v629_v51 = vadd.f32 %v628_v50, %v1603_v17  ;;  %v630_v52 = vpop.f32.mrb[13].mxu1  ;;  %1239 = vmatpush3.bf16.msra.mxu1 %v1238_v49 }
 0x20b   :  { %v631_v54 = vpop.f32.mrb[14].mxu1  ;;  %1240 = vmatprep.subr.bf16.mxu1 %v1374_v10  ;;  %v1104_v52 = vsel %vm719_vm8, 1.0, %v1376_v11 }
 0x20c   :  { %v632_v59 = vadd.f32 %v631_v54, %v1603_v17  ;;  %v633_v60 = vpop.f32.mrb[15].mxu1  ;;  %v673_v61 = vmax.f32 %v629_v51, 0.0 }
 0x20e   :  { %v674_v62 = vmax.f32 %v632_v59, 0.0 }
 0x210   :  { %v1241_v4 = vpack.c.bf16 %v674_v62, %v673_v61 }
 0x211   :  { %v636_v5 = vpop.f32.mrb[16].mxu1 }
 0x212   :  { %v637_v2 = vadd.f32 %v636_v5, %v1603_v17  ;;  %v638_v6 = vpop.f32.mrb[17].mxu1  ;;  %1242 = vmatpush3.bf16.msra.mxu1 %v1241_v4 }
 0x213   :  { %v639_v9 = vpop.f32.mrb[18].mxu1  ;;  %1255 = vmatprep.subr.bf16.mxu1 %v1374_v10 }
 0x214   :  { %v640_v16 = vadd.f32 %v639_v9, %v1603_v17  ;;  %v641_v18 = vpop.f32.mrb[19].mxu1  ;;  %v675_v19 = vmax.f32 %v637_v2, 0.0 }
 0x215   :  { %1174 = vmatmul.mubr.msk.f32.vlgmr.msra.gmra.mrb[32].mxu1 %vm735_vm3, %v1627_v7 }
 0x216   :  { %v676_v20 = vmax.f32 %v640_v16, 0.0  ;;  %1176 = vmatprep.mubr.msk.f32.mxu1 %vm1375_vm1, %v1376_v11 }
 0x218   :  { %v1244_v26 = vpack.c.bf16 %v676_v20, %v675_v19 }
 0x219   :  { %v644_v27 = vpop.f32.mrb[20].mxu1  ;;  %1177 = vmatmul.mubr.msk.f32.gmra.mrb[34].mxu1 %vm735_vm3, %v1638_v21 }
 0x21a   :  { %v645_v28 = vadd.f32 %v644_v27, %v1603_v17  ;;  %1245 = vmatpush3.bf16.msra.mxu0 %v1244_v26  ;;  %1259 = vmatpush3.bf16.msra.mxu1 %v1244_v26  ;;  %v646_v29 = vpop.f32.mrb[21].mxu1 }
 0x21b   :  { %v647_v31 = vpop.f32.mrb[22].mxu1  ;;  %1246 = vmatprep.subr.bf16.mxu0 %v1374_v10  ;;  %1256 = vmatprep.subr.bf16.mxu1 %v1374_v10 }
 0x21c   :  { %v648_v34 = vadd.f32 %v647_v31, %v1603_v17  ;;  %v649_v35 = vpop.f32.mrb[23].mxu1  ;;  %1179 = vmatprep.mubr.msk.f32.mxu1 %vm1375_vm1, %v1376_v11  ;;  %v677_v36 = vmax.f32 %v645_v28, 0.0 }
 0x21d   :  { %1180 = vmatmul.mubr.msk.f32.gmra.mrb[36].mxu1 %vm735_vm3, %v1646_v30 }
 0x21e   :  { %v678_v37 = vmax.f32 %v648_v34, 0.0  ;;  %1182 = vmatprep.mubr.msk.f32.mxu1 %vm1375_vm1, %v1376_v11 }
 0x220   :  { %v1247_v41 = vpack.c.bf16 %v678_v37, %v677_v36 }
 0x221   :  { %v652_v42 = vpop.f32.mrb[24].mxu1  ;;  %1183 = vmatmul.mubr.msk.f32.gmra.mrb[38].mxu1 %vm735_vm3, %v1102_v38 }
 0x222   :  { %1248 = vmatpush3.bf16.msra.mxu0 %v1247_v41  ;;  %1260 = vmatpush3.bf16.msra.mxu1 %v1247_v41  ;;  %v653_v43 = vadd.f32 %v652_v42, %v1603_v17  ;;  %v654_v44 = vpop.f32.mrb[25].mxu1 }
 0x223   :  { %v655_v46 = vpop.f32.mrb[26].mxu1  ;;  %1249 = vmatprep.subr.bf16.mxu0 %v1374_v10  ;;  %1257 = vmatprep.subr.bf16.mxu1 %v1374_v10 }
 0x224   :  { %v656_v48 = vadd.f32 %v655_v46, %v1603_v17  ;;  %v657_v49 = vpop.f32.mrb[27].mxu1  ;;  %1185 = vmatprep.mubr.msk.f32.mxu1 %vm1375_vm1, %v1376_v11  ;;  %v679_v50 = vmax.f32 %v653_v43, 0.0 }
 0x225   :  { %1186 = vmatmul.mubr.msk.f32.gmra.mrb[40].mxu1 %vm735_vm3, %v1103_v45 }
 0x226   :  { %v680_v51 = vmax.f32 %v656_v48, 0.0  ;;  %1188 = vmatprep.mubr.msk.f32.mxu1 %vm1375_vm1, %v1376_v11 }
 0x228   :  { %v1250_v53 = vpack.c.bf16 %v680_v51, %v679_v50 }
 0x229   :  { %v660_v54 = vpop.f32.mrb[28].mxu1  ;;  %1189 = vmatmul.mubr.msk.f32.gmra.mrb[42].mxu1 %vm735_vm3, %v1104_v52 }
 0x22a   :  { %1251 = vmatpush3.bf16.msra.mxu0 %v1250_v53  ;;  %1261 = vmatpush3.bf16.msra.mxu1 %v1250_v53  ;;  %v661_v56 = vadd.f32 %v660_v54, %v1603_v17  ;;  %v662_v57 = vpop.f32.mrb[29].mxu1 }
 0x22b   :  { %v663_v59 = vpop.f32.mrb[30].mxu1  ;;  %1252 = vmatprep.subr.bf16.mxu0 %v1374_v10  ;;  %1258 = vmatprep.subr.bf16.mxu1 %v1374_v10 }
 0x22c   :  { %v664_v60 = vadd.f32 %v663_v59, %v1603_v17  ;;  %v665_v61 = vpop.f32.mrb[31].mxu1  ;;  %1191 = vmatprep.mubr.msk.f32.mxu1 %vm1375_vm1, %v1376_v11  ;;  %v681_v55 = vmax.f32 %v661_v56, 0.0 }
 0x22d   :  { %1192 = vmatmul.mubr.msk.f32.gmra.mrb[44].mxu1 %vm735_vm3, %v1105_v58 }
 0x22e   :  { %v682_v62 = vmax.f32 %v664_v60, 0.0  ;;  %1222 = vmatprep.mubr.msk.f32.mxu1 %vm1375_vm1, %v1376_v11 }
 0x230   :  { %v1253_v63 = vpack.c.bf16 %v682_v62, %v681_v55 }
 0x232   :  { %1254 = vmatpush3.bf16.msra.mxu0 %v1253_v63  ;;  %1262 = vmatpush3.bf16.msra.mxu1 %v1253_v63 }
 0x235   :  { %1211 = vmatmul.mubr.msk.f32.vlgmr.msra.gmra.mrb[32].mxu0 %vm735_vm3, %v1627_v7  ;;  %1223 = vmatmul.mubr.msk.f32.vlgmr.msra.gmra.mrb[46].mxu1 %vm735_vm3, %v1103_v45 }
 0x236   :  { %1213 = vmatprep.mubr.msk.f32.mxu0 %vm1375_vm1, %v1376_v11  ;;  %1225 = vmatprep.mubr.msk.f32.mxu1 %vm1375_vm1, %v1376_v11 }
 0x239   :  { %1214 = vmatmul.mubr.msk.f32.gmra.mrb[34].mxu0 %vm735_vm3, %v1638_v21  ;;  %1226 = vmatmul.mubr.msk.f32.gmra.mrb[48].mxu1 %vm735_vm3, %v1104_v52 }
 0x23a   :  { %1216 = vmatprep.mubr.msk.f32.mxu0 %vm1375_vm1, %v1376_v11  ;;  %1228 = vmatprep.mubr.msk.f32.mxu1 %vm1375_vm1, %v1376_v11 }
 0x23d   :  { %1217 = vmatmul.mubr.msk.f32.gmra.mrb[36].mxu0 %vm735_vm3, %v1646_v30  ;;  %1229 = vmatmul.mubr.msk.f32.gmra.mrb[50].mxu1 %vm735_vm3, %v1105_v58 }
 0x23e   :  { %1219 = vmatprep.mubr.msk.f32.mxu0 %vm1375_vm1, %v1376_v11 }
 0x241   :  { %1220 = vmatmul.mubr.msk.f32.gmra.mrb[38].mxu0 %vm735_vm3, %v1102_v38 }
 0x2e8   :  { %v823_v10 = vpop.f32.mrb[32].mxu1 }
 0x2e9   :  { %858 = vst.msk [vmem:[%s1792_s3] sm:$0xff] %vm857_vm10, %v823_v10  ;;  %v1175_v17 = vpop.f32.mrb[33].mxu1  ;;  %v866_v0 = vsel %vm857_vm10, %v823_v10, 0.0 }
 0x2ec   :  { %v828_v1 = vpop.f32.mrb[34].mxu1 }
 0x2ed   :  { %859 = vst.msk [vmem:[%s1792_s3 + $0x8] sm:$0xff] %vm857_vm10, %v828_v1  ;;  %v867_v11 = vsel %vm857_vm10, %v828_v1, 0.0  ;;  %v1178_v3 = vpop.f32.mrb[35].mxu1 }
 0x2ee   :  { %v868_v4 = vadd.f32 %v867_v11, %v866_v0 }
 0x2f0   :  { %v833_v5 = vpop.f32.mrb[36].mxu1 }
 0x2f1   :  { %860 = vst.msk [vmem:[%s1792_s3 + $0x10] sm:$0xff] %vm857_vm10, %v833_v5  ;;  %v869_v2 = vsel %vm857_vm10, %v833_v5, 0.0  ;;  %v1181_v6 = vpop.f32.mrb[37].mxu1 }
 0x2f2   :  { %v870_v7 = vadd.f32 %v869_v2, %v868_v4 }
 0x2f4   :  { %v838_v8 = vpop.f32.mrb[38].mxu1 }
 0x2f5   :  { %861 = vst.msk [vmem:[%s1792_s3 + $0x18] sm:$0xff] %vm857_vm10, %v838_v8  ;;  %v871_v9 = vsel %vm857_vm10, %v838_v8, 0.0  ;;  %v1184_v12 = vpop.f32.mrb[39].mxu1 }
 0x2f6   :  { %v872_v14 = vadd.f32 %v871_v9, %v870_v7 }
 0x2f8   :  { %v843_v15 = vpop.f32.mrb[40].mxu1 }
 0x2f9   :  { %862 = vst.msk [vmem:[%s1792_s3 + $0x20] sm:$0xff] %vm857_vm10, %v843_v15  ;;  %v873_v16 = vsel %vm857_vm10, %v843_v15, 0.0  ;;  %v1187_v18 = vpop.f32.mrb[41].mxu1 }
 0x2fa   :  { %v874_v19 = vadd.f32 %v873_v16, %v872_v14 }
 0x2fc   :  { %v848_v20 = vpop.f32.mrb[42].mxu1 }
 0x2fd   :  { %863 = vst.msk [vmem:[%s1792_s3 + $0x28] sm:$0xff] %vm857_vm10, %v848_v20  ;;  %v875_v21 = vsel %vm857_vm10, %v848_v20, 0.0  ;;  %v1190_v22 = vpop.f32.mrb[43].mxu1 }
 0x2fe   :  { %v876_v23 = vadd.f32 %v875_v21, %v874_v19 }
 0x300   :  { %v853_v24 = vpop.f32.mrb[44].mxu1 }
 0x301   :  { %865 = vst.msk [vmem:[%s1792_s3 + $0x30] sm:$0x1] %vm864_vm11, %v853_v24  ;;  %v877_v25 = vsel %vm864_vm11, %v853_v24, 0.0  ;;  %v1193_v26 = vpop.f32.mrb[45].mxu1 }
 0x302   :  { %v878_v27 = vadd.f32 %v877_v25, %v876_v23 }
 0x304   :  { %v879_v28 = vrot.slane %v878_v27, 4 }
 0x306   :  { %v880_v29 = vadd.f32 %v879_v28, %v878_v27 }
 0x308   :  { %v881_v30 = vrot.slane %v880_v29, 2  ;;  %v953_v31 = vpop.f32.mrb[32].mxu0  ;;  %v973_v13 = vpop.f32.mrb[46].mxu1 }
 0x309   :  { %1120 = vst.msk [vmem:[%s1792_s3 + $0x38] sm:$0xff] %vm857_vm10, %v953_v31  ;;  %v1212_v32 = vpop.f32.mrb[33].mxu0  ;;  %1124 = vst.msk [vmem:[%s1792_s3 + $0x58] sm:$0xff] %vm857_vm10, %v973_v13  ;;  %v1224_v33 = vpop.f32.mrb[47].mxu1  ;;  %v995_v38 = vsel %vm857_vm10, %v953_v31, 0.0  ;;  %v1002_v56 = vsel %vm857_vm10, %v973_v13, 0.0 }
 0x30a   :  { %v882_v34 = vadd.f32 %v881_v30, %v880_v29 }
 0x30c   :  { %v958_v35 = vpop.f32.mrb[34].mxu0  ;;  %v978_v36 = vpop.f32.mrb[48].mxu1  ;;  %v883_v37 = vrot.slane %v882_v34, 1 }
 0x30d   :  { %1121 = vst.msk [vmem:[%s1792_s3 + $0x40] sm:$0xff] %vm857_vm10, %v958_v35  ;;  %v996_v39 = vsel %vm857_vm10, %v958_v35, 0.0  ;;  %v1215_v40 = vpop.f32.mrb[35].mxu0  ;;  %1125 = vst.msk [vmem:[%s1792_s3 + $0x60] sm:$0xff] %vm857_vm10, %v978_v36  ;;  %v1227_v41 = vpop.f32.mrb[49].mxu1  ;;  %v1004_v58 = vsel %vm857_vm10, %v978_v36, 0.0 }
 0x30e   :  { %v997_v42 = vadd.f32 %v996_v39, %v995_v38  ;;  %v884_v43 = vadd.f32 %v883_v37, %v882_v34 }
 0x310   :  { %v963_v44 = vpop.f32.mrb[36].mxu0  ;;  %v983_v45 = vpop.f32.mrb[50].mxu1  ;;  %v885_v46 = vmul.f32 0.020408163, %v884_v43 }
 0x311   :  { %1122 = vst.msk [vmem:[%s1792_s3 + $0x48] sm:$0xff] %vm857_vm10, %v963_v44  ;;  %v998_v47 = vsel %vm857_vm10, %v963_v44, 0.0  ;;  %v1218_v48 = vpop.f32.mrb[37].mxu0  ;;  %v1230_v49 = vpop.f32.mrb[51].mxu1  ;;  %v1006_v59 = vsel %vm864_vm11, %v983_v45, 0.0 }
 0x312   :  { %1126 = vst.msk [vmem:[%s1792_s3 + $0x68] sm:$0x1] %vm864_vm11, %v983_v45  ;;  %v999_v50 = vadd.f32 %v998_v47, %v997_v42  ;;  %886 = vst.msk [vmem:[#allocation2] sm:$0x1] %vm864_vm11, %v885_v46 }
 0x314   :  { %v968_v51 = vpop.f32.mrb[38].mxu0 }
 0x315   :  { %1123 = vst.msk [vmem:[%s1792_s3 + $0x50] sm:$0xff] %vm857_vm10, %v968_v51  ;;  %v1000_v52 = vsel %vm857_vm10, %v968_v51, 0.0  ;;  %v1221_v53 = vpop.f32.mrb[39].mxu0  ;;  %s1024_s3 = sshll.u32 %s1377_s1, 4  ;;  %s1025_s3 = int_to_ptr.vmem [resolvable:$true] %s1024_s3 }
 0x316   :  { %v1001_v54 = vadd.f32 %v1000_v52, %v999_v50  ;;  %s1349_s2 = scalar_lea.vmem %s1025_s3, 32  ;;  %p1354_p1 = scmp.lt.s32.totalorder %s1025_s3, %s1025_s3 }
 0x317   :  { %p1350_p0 = scmp.ne.s32.totalorder %s1025_s3, %s1349_s2  ;;  %p1355_p2 = scmp.lt.s32.totalorder %s1349_s2, %s1349_s2 }
 0x318   :  { %v1003_v57 = vadd.f32 %v1002_v56, %v1001_v54 }
 0x319   :  { %p1356_p3 = por %p1355_p2, %p1354_p1 }
 0x31a   :  { %v1005_v60 = vadd.f32 %v1004_v58, %v1003_v57 }
 0x31b   :  { %p1357_p4 = pnand %p1356_p3, %p1350_p0 }
 0x31c   :  { %v1007_v61 = vadd.f32 %v1006_v59, %v1005_v60 }
 0x31e   :  { %v1008_v55 = vrot.slane %v1007_v61, 4 }
 0x320   :  { %v1009_v62 = vadd.f32 %v1008_v55, %v1007_v61 }
 0x322   :  { %v1010_v63 = vrot.slane %v1009_v62, 2 }
 0x324   :  { %v1011_v10 = vadd.f32 %v1010_v63, %v1009_v62 }
 0x326   :  { %v1012_v17 = vrot.slane %v1011_v10, 1 }
 0x328   :  { %v1013_v0 = vadd.f32 %v1012_v17, %v1011_v10 }
 0x32a   :  { %v1014_v1 = vmul.f32 0.020408163, %v1013_v0 }
 0x32c   :  { %1015 = vst.msk [vmem:[#allocation2 + $0x1] sm:$0x1] %vm864_vm11, %v1014_v1 }
 0x32d   :  { %1360 = shalt.err (!%p1357_p4)
}
 0x32e   :  { %s1361_s26 = scalar_lea.hbm %s1793_s4, 32 }
 0x32f   :  { %p1362_p5 = scmp.ne.s32.totalorder %s1793_s4, %s1361_s26  ;;  %p1365_p6 = scmp.lt.u32.totalorder %s1361_s26, %s1793_s4 }
 0x331   :  { %p1367_p7 = pnand %p1365_p6, %p1362_p5 }
 0x333   :  { %1370 = shalt.err (!%p1367_p7)
}
 0x334   :  { %1027 = dma.vmem_to_hbm [thread:$0]  %s1025_s3, 32, %s1793_s4, [#allocation3]  }
 0x335   :  { %1371 = dma.done.wait [#allocation3], 32  }
 0x336   :  { %1372 = vsyncadd [#allocation3], 4294967264 }
 0x337   :  { %1033 = vsyncpa [#allocation3], 1 }

</bundles_post_ra>
